<compile_context>
chip_gen: v6e
topology: v6e:2x2x1
jax: 0.10.0
libtpu: 0.0.40
codegen_flags: <defaults>
</compile_context>

<pallas_src>
import jax
import jax.numpy as jnp
import numpy as np
from jax.experimental import pallas as pl
from jax.experimental.pallas import tpu as pltpu

EMBED_DIM = 32       # embed_dim == hidden_size
RNN_LAYERS = 1       # rnn_layer_num
CLASS_NUM = 4        # class_num
BATCH = 2
SEQ_LEN = 8
NUM_BRANCHES = 2     # demand + supply


# ------------------------------- kernel -------------------------------------
def _make_kernel(num_layers: int, seq_len: int):
    """Fused demand+supply: (amplify->GRU->decode->log_softmax) in one program."""

    def kernel(*refs):
        if num_layers > 1:
            (len_ref, x_ref, coef_ref, const_ref, whh_ref, bhn_ref,
             wih_rest_ref, gxb_rest_ref,
             w1_ref, b1_ref, w2_ref, b2_ref, out_ref) = refs
        else:
            (len_ref, x_ref, coef_ref, const_ref, whh_ref, bhn_ref,
             w1_ref, b1_ref, w2_ref, b2_ref, out_ref) = refs
            wih_rest_ref = gxb_rest_ref = None

        T = seq_len
        TB, NH = x_ref.shape            # (T*B, 2H)   branch-major hidden lanes
        B = TB // T
        length = len_ref[0]             # dynamic effective length (<= T)

        # ---- hoisted, lane-dense layer-0 input projection --------------------
        #   gx = x * (amp_W @ W_ih) + (amp_b @ W_ih + b_ih + b_hh[r,z])
        # column layout: [ r(2H) | z(2H) | n(2H) ], branch-major inside each gate
        xr = x_ref[...]                                          # (T*B, 2H)
        x3 = jnp.concatenate([xr, xr, xr], axis=-1)              # (T*B, 6H)
        gx_all = x3 * coef_ref[...] + const_ref[...]             # (T*B, 6H)

        prev_outs = None
        h = jnp.zeros((B, NH), jnp.float32)
        for layer in range(num_layers):
            whh_l = whh_ref[layer]                               # (2H, 6H)
            bhn_l = bhn_ref[layer]                               # (1, 2H)
            if layer > 0:
                wih_l = wih_rest_ref[layer - 1]                  # (2H, 6H)
                gxb_l = gxb_rest_ref[layer - 1]                  # (1, 6H)

            outs = []
            h = jnp.zeros((B, NH), jnp.float32)
            for t in range(T):           # fully unrolled; dynamic length via select
                if layer == 0:
                    gx = gx_all[t * B:(t + 1) * B, :]            # (B, 6H)
                else:
                    # cold path for num_layers == 1
                    gx = jnp.dot(prev_outs[t], wih_l,
                                 preferred_element_type=jnp.float32) + gxb_l
                # single merged recurrent matmul on the serial chain
                gh = jnp.dot(h, whh_l,
                             preferred_element_type=jnp.float32)  # (B, 6H)
                rz = jax.nn.sigmoid(gx[:, :2 * NH] + gh[:, :2 * NH])   # one vreg
                r = rz[:, :NH]
                z = rz[:, NH:]
                n = jnp.tanh(gx[:, 2 * NH:] + r * (gh[:, 2 * NH:] + bhn_l))
                h_new = (1.0 - z) * n + z * h
                h = jnp.where(jnp.asarray(t, jnp.int32) < length, h_new, h)
                if layer < num_layers - 1:   # no dead writeback for last layer
                    outs.append(h)
            prev_outs = outs

        # ---- merged decoder: Linear -> ReLU -> Linear -> log_softmax ---------
        h1 = jnp.maximum(
            jnp.dot(h, w1_ref[...], preferred_element_type=jnp.float32)
            + b1_ref[...], 0.0)                                  # (B, 2H)
        logits = (jnp.dot(h1, w2_ref[...], preferred_element_type=jnp.float32)
                  + b2_ref[...])                                 # (B, 2C)
        C = logits.shape[-1] // 2

        def lsm(lg):
            m = jnp.max(lg, axis=-1, keepdims=True)
            return lg - (jnp.log(jnp.sum(jnp.exp(lg - m), axis=-1,
                                         keepdims=True)) + m)

        out_ref[...] = jnp.concatenate([lsm(logits[:, :C]), lsm(logits[:, C:])],
                                       axis=-1)                  # (B, 2C)

    return kernel


# --------------------------- host-side packing -------------------------------
def _block_diag(a, b):
    """(H,K),(H,K) -> (2H,2K) block-diagonal [[a,0],[0,b]]."""
    z_top = jnp.zeros((a.shape[0], b.shape[1]), a.dtype)
    z_bot = jnp.zeros((b.shape[0], a.shape[1]), a.dtype)
    return jnp.concatenate([jnp.concatenate([a, z_top], axis=1),
                            jnp.concatenate([z_bot, b], axis=1)], axis=0)


def pack_params(params_demand, params_supply):
    """Merge both branches into block-diagonal, gate-concatenated weights.

    Column layout everywhere: [ r | z | n ] gate-major, branch-major (demand
    then supply) inside each gate block.  h layout: [demand H | supply H].
    """
    (aw_d, ab_d, wih_d, bih_d, whh_d, bhh_d, w1_d, b1_d, w2_d, b2_d) = params_demand
    (aw_s, ab_s, wih_s, bih_s, whh_s, bhh_s, w1_s, b1_s, w2_s, b2_s) = params_supply
    L, _, H3 = wih_d.shape
    H = H3 // 3

    def gate_cols(w, g):
        return w[..., g * H:(g + 1) * H]

    # merged recurrent weight (block-diag over branches, concat over gates)
    whh_m = jnp.stack([
        jnp.concatenate([_block_diag(gate_cols(whh_d[l], g), gate_cols(whh_s[l], g))
                         for g in range(3)], axis=1)
        for l in range(L)], axis=0)                               # (L, 2H, 6H)

    # n-gate recurrent bias (must stay inside r * (.) -> added per step)
    bhn_m = jnp.stack([
        jnp.concatenate([gate_cols(bhh_d[l], 2), gate_cols(bhh_s[l], 2)], axis=1)
        for l in range(L)], axis=0)                               # (L, 1, 2H)

    # layer-0 hoisted input projection:  gx = x * coef + const
    def coef_const(aw, ab, wih0, bih0, bhh0):
        coefs, consts = [], []
        for g in range(3):
            wg = gate_cols(wih0, g)                               # (E, H)
            coefs.append(aw @ wg)                                 # (1, H)
            c = ab @ wg + gate_cols(bih0, g)
            if g < 2:                                             # fold b_hh for r, z
                c = c + gate_cols(bhh0, g)
            consts.append(c)
        return coefs, consts

    cd, kd = coef_const(aw_d, ab_d, wih_d[0], bih_d[0], bhh_d[0])
    cs, ks = coef_const(aw_s, ab_s, wih_s[0], bih_s[0], bhh_s[0])
    coef_m = jnp.concatenate([jnp.concatenate([cd[g], cs[g]], axis=1)
                              for g in range(3)], axis=1)         # (1, 6H)
    const_m = jnp.concatenate([jnp.concatenate([kd[g], ks[g]], axis=1)
                               for g in range(3)], axis=1)        # (1, 6H)

    extra = ()
    if L > 1:
        wih_rest = jnp.stack([
            jnp.concatenate([_block_diag(gate_cols(wih_d[l], g), gate_cols(wih_s[l], g))
                             for g in range(3)], axis=1)
            for l in range(1, L)], axis=0)                        # (L-1, 2H, 6H)

        def gxb(l):
            parts = []
            for g in range(3):
                bd_ = gate_cols(bih_d[l], g)
                bs_ = gate_cols(bih_s[l], g)
                if g < 2:
                    bd_ = bd_ + gate_cols(bhh_d[l], g)
                    bs_ = bs_ + gate_cols(bhh_s[l], g)
                parts.append(jnp.concatenate([bd_, bs_], axis=1))
            return jnp.concatenate(parts, axis=1)                 # (1, 6H)

        gxb_rest = jnp.stack([gxb(l) for l in range(1, L)], axis=0)
        extra = (wih_rest, gxb_rest)

    # merged decoder
    w1_m = _block_diag(w1_d, w1_s)                                # (2H, 2H)
    b1_m = jnp.concatenate([b1_d, b1_s], axis=1)                  # (1, 2H)
    w2_m = _block_diag(w2_d, w2_s)                                # (2H, 2C)
    b2_m = jnp.concatenate([b2_d, b2_s], axis=1)                  # (1, 2C)

    return (coef_m, const_m, whh_m, bhn_m) + extra + (w1_m, b1_m, w2_m, b2_m)


def base_rnn_model_forward(x, l, params_demand, params_supply):
    """Mirrors BaseRNNModel.forward: returns ((d_y, s_y), 0, 0, 0)."""
    d_x, s_x = x
    B, T = d_x.shape
    E = params_demand[0].shape[1]
    C = params_demand[8].shape[-1]
    L = params_demand[2].shape[0]
    H = E

    # Lane-dense input slab (pure layout plumbing): row = t*B + b,
    # cols = [demand x broadcast over H | supply x broadcast over H].
    # NOTE: with a larger real batch, more sequences fold onto the sublane axis
    # here for free (same call, same serial latency).
    x_tbn = jnp.transpose(jnp.stack([d_x, s_x], axis=0), (2, 1, 0))   # (T, B, N)
    x_rep = jnp.repeat(x_tbn, H, axis=-1).reshape(T * B, 2 * H)
    x_rep = x_rep.astype(jnp.float32)

    length = jnp.reshape(jnp.asarray(l, jnp.int32), (1,))
    packed = pack_params(params_demand, params_supply)

    vmem = pl.BlockSpec(memory_space=pltpu.MemorySpace.VMEM)
    smem = pl.BlockSpec(memory_space=pltpu.MemorySpace.SMEM)

    out = pl.pallas_call(
        _make_kernel(L, T),
        out_shape=jax.ShapeDtypeStruct((B, 2 * C), jnp.float32),
        in_specs=[smem, vmem] + [vmem] * len(packed),
        out_specs=vmem,
    )(length, x_rep, *packed)

    d_y, s_y = out[:, :C], out[:, C:]
    return ((d_y, s_y), 0, 0, 0)


# ------------------------------ parameter init -------------------------------
def init_branch_params(key, E, L, C):
    """Deterministic init mirroring PyTorch default uniform(-1/sqrt(fan), ...)."""
    ks = jax.random.split(key, 10)

    def u(k, shape, fan):
        bound = 1.0 / np.sqrt(fan)
        return jax.random.uniform(k, shape, jnp.float32, -bound, bound)

    amp_w = u(ks[0], (1, E), 1)            # Linear(1, E).weight.T
    amp_b = u(ks[1], (1, E), 1)
    wih = u(ks[2], (L, E, 3 * E), E)       # GRU weight_ih_l{k}.T  (r|z|n)
    whh = u(ks[3], (L, E, 3 * E), E)       # GRU weight_hh_l{k}.T
    bih = u(ks[4], (L, 1, 3 * E), E)
    bhh = u(ks[5], (L, 1, 3 * E), E)
    w1 = u(ks[6], (E, E), E)               # decoder Linear(E, E).weight.T
    b1 = u(ks[7], (1, E), E)
    w2 = u(ks[8], (E, C), E)               # decoder Linear(E, C).weight.T
    b2 = u(ks[9], (1, C), E)
    return (amp_w, amp_b, wih, bih, whh, bhh, w1, b1, w2, b2)


# ---------------- pure-JAX reference (sanity check) ---------------------------
def ref_branch(x, length, params):
    amp_w, amp_b, wih, bih, whh, bhh, w1, b1, w2, b2 = params
    B, T = x.shape
    E = amp_w.shape[1]
    H = E
    seq = x[:, :, None] * amp_w[None] + amp_b[None]          # (B, T, E)
    h = jnp.zeros((B, H), jnp.float32)
    for layer in range(wih.shape[0]):
        h = jnp.zeros((B, H), jnp.float32)
        outs = []
        for t in range(int(length)):
            gx = seq[:, t] @ wih[layer] + bih[layer]
            gh = h @ whh[layer] + bhh[layer]
            r = jax.nn.sigmoid(gx[:, :H] + gh[:, :H])
            z = jax.nn.sigmoid(gx[:, H:2 * H] + gh[:, H:2 * H])
            n = jnp.tanh(gx[:, 2 * H:] + r * gh[:, 2 * H:])
            h = (1.0 - z) * n + z * h
            outs.append(h)
        seq = jnp.stack(outs, axis=1)
    h1 = jnp.maximum(h @ w1 + b1, 0.0)
    logits = h1 @ w2 + b2
    return jax.nn.log_softmax(logits, axis=-1)


if __name__ == "__main__":
    key = jax.random.PRNGKey(0)
    k_d, k_s, k_pd, k_ps = jax.random.split(key, 4)

    d_x = jax.random.normal(k_d, (BATCH, SEQ_LEN), jnp.float32)
    s_x = jax.random.normal(k_s, (BATCH, SEQ_LEN), jnp.float32)
    l = jnp.array(SEQ_LEN, jnp.int32)     # scalar length (expanded to batch in torch)

    params_d = init_branch_params(k_pd, EMBED_DIM, RNN_LAYERS, CLASS_NUM)
    params_s = init_branch_params(k_ps, EMBED_DIM, RNN_LAYERS, CLASS_NUM)

    (d_y, s_y), _, _, _ = base_rnn_model_forward((d_x, s_x), l, params_d, params_s)
    jax.block_until_ready((d_y, s_y))

    # sanity check against pure-JAX reference (full length)
    ref_d = ref_branch(d_x, SEQ_LEN, params_d)
    ref_s = ref_branch(s_x, SEQ_LEN, params_s)
    np.testing.assert_allclose(np.asarray(d_y), np.asarray(ref_d), atol=2e-3, rtol=2e-3)
    np.testing.assert_allclose(np.asarray(s_y), np.asarray(ref_s), atol=2e-3, rtol=2e-3)

    # shorter dynamic length exercises the masked-recurrence path
    l_short = jnp.array(5, jnp.int32)
    (d_y5, s_y5), _, _, _ = base_rnn_model_forward((d_x, s_x), l_short, params_d, params_s)
    jax.block_until_ready((d_y5, s_y5))
    np.testing.assert_allclose(np.asarray(d_y5), np.asarray(ref_branch(d_x, 5, params_d)),
                               atol=2e-3, rtol=2e-3)
    np.testing.assert_allclose(np.asarray(s_y5), np.asarray(ref_branch(s_x, 5, params_s)),
                               atol=2e-3, rtol=2e-3)

    print("KERNEL_OK")
</pallas_src>

<mosaic_0001>
module attributes {stable_mosaic.version = 11 : i64} {
  func.func @kernel(%arg0: memref<1xi32, #tpu.memory_space<smem>>, %arg1: memref<16x64xf32, #tpu.memory_space<vmem>>, %arg2: memref<1x192xf32, #tpu.memory_space<vmem>>, %arg3: memref<1x192xf32, #tpu.memory_space<vmem>>, %arg4: memref<1x64x192xf32, #tpu.memory_space<vmem>>, %arg5: memref<1x1x64xf32, #tpu.memory_space<vmem>>, %arg6: memref<64x64xf32, #tpu.memory_space<vmem>>, %arg7: memref<1x64xf32, #tpu.memory_space<vmem>>, %arg8: memref<64x8xf32, #tpu.memory_space<vmem>>, %arg9: memref<1x8xf32, #tpu.memory_space<vmem>>, %arg10: memref<2x8xf32, #tpu.memory_space<vmem>>) attributes {dimension_semantics = [], scalar_prefetch = 0 : i64, scratch_operands = 0 : i64, tpu.core_type = #tpu.core_type<tc>} {
    %c0 = arith.constant 0 : index
    %0 = memref.load %arg0[%c0] : memref<1xi32, #tpu.memory_space<smem>>
    %c0_0 = arith.constant 0 : index
    %c0_1 = arith.constant 0 : index
    %1 = vector.load %arg1[%c0_0, %c0_1] : memref<16x64xf32, #tpu.memory_space<vmem>>, vector<16x64xf32>
    %2 = tpu.concatenate %1, %1, %1 in 1 : vector<16x64xf32>, vector<16x64xf32>, vector<16x64xf32> -> vector<16x192xf32>
    %c0_2 = arith.constant 0 : index
    %c0_3 = arith.constant 0 : index
    %3 = vector.load %arg2[%c0_2, %c0_3] : memref<1x192xf32, #tpu.memory_space<vmem>>, vector<1x192xf32>
    %4 = vector.broadcast %3 : vector<1x192xf32> to vector<16x192xf32>
    %5 = arith.mulf %2, %4 : vector<16x192xf32>
    %c0_4 = arith.constant 0 : index
    %c0_5 = arith.constant 0 : index
    %6 = vector.load %arg3[%c0_4, %c0_5] : memref<1x192xf32, #tpu.memory_space<vmem>>, vector<1x192xf32>
    %7 = vector.broadcast %6 : vector<1x192xf32> to vector<16x192xf32>
    %8 = arith.addf %5, %7 : vector<16x192xf32>
    %c0_6 = arith.constant 0 : index
    %c0_7 = arith.constant 0 : index
    %c0_8 = arith.constant 0 : index
    %9 = vector.load %arg4[%c0_6, %c0_7, %c0_8] : memref<1x64x192xf32, #tpu.memory_space<vmem>>, vector<1x64x192xf32>
    %10 = vector.shape_cast %9 : vector<1x64x192xf32> to vector<64x192xf32>
    %c0_9 = arith.constant 0 : index
    %c0_10 = arith.constant 0 : index
    %c0_11 = arith.constant 0 : index
    %11 = vector.load %arg5[%c0_9, %c0_10, %c0_11] : memref<1x1x64xf32, #tpu.memory_space<vmem>>, vector<1x1x64xf32>
    %12 = vector.shape_cast %11 : vector<1x1x64xf32> to vector<1x64xf32>
    %cst = arith.constant 0.000000e+00 : f32
    %13 = vector.broadcast %cst : f32 to vector<2x64xf32>
    %14 = vector.extract_strided_slice %8 {offsets = [0, 0], sizes = [2, 192], strides = [1, 1]} : vector<16x192xf32> to vector<2x192xf32>
    %cst_12 = arith.constant dense<0.000000e+00> : vector<2x192xf32>
    %15 = tpu.matmul %13, %10, %cst_12 {dimension_numbers = #tpu.dot_dimension_numbers<[1], [0], [0], [1], [0, 0, 1, 1], [], []>} : vector<2x64xf32>, vector<64x192xf32>, vector<2x192xf32> -> vector<2x192xf32>
    %16 = vector.extract_strided_slice %14 {offsets = [0, 0], sizes = [2, 128], strides = [1, 1]} : vector<2x192xf32> to vector<2x128xf32>
    %17 = vector.extract_strided_slice %15 {offsets = [0, 0], sizes = [2, 128], strides = [1, 1]} : vector<2x192xf32> to vector<2x128xf32>
    %18 = arith.addf %16, %17 : vector<2x128xf32>
    %19 = arith.negf %18 : vector<2x128xf32>
    %20 = math.exp %19 : vector<2x128xf32>
    %cst_13 = arith.constant 1.000000e+00 : f32
    %21 = vector.broadcast %cst_13 : f32 to vector<2x128xf32>
    %22 = arith.addf %21, %20 : vector<2x128xf32>
    %23 = arith.divf %21, %22 : vector<2x128xf32>
    %24 = vector.extract_strided_slice %23 {offsets = [0, 0], sizes = [2, 64], strides = [1, 1]} : vector<2x128xf32> to vector<2x64xf32>
    %25 = vector.extract_strided_slice %23 {offsets = [0, 64], sizes = [2, 64], strides = [1, 1]} : vector<2x128xf32> to vector<2x64xf32>
    %26 = vector.extract_strided_slice %14 {offsets = [0, 128], sizes = [2, 64], strides = [1, 1]} : vector<2x192xf32> to vector<2x64xf32>
    %27 = vector.extract_strided_slice %15 {offsets = [0, 128], sizes = [2, 64], strides = [1, 1]} : vector<2x192xf32> to vector<2x64xf32>
    %28 = vector.broadcast %12 : vector<1x64xf32> to vector<2x64xf32>
    %29 = arith.addf %27, %28 : vector<2x64xf32>
    %30 = arith.mulf %24, %29 : vector<2x64xf32>
    %31 = arith.addf %26, %30 : vector<2x64xf32>
    %32 = math.tanh %31 : vector<2x64xf32>
    %cst_14 = arith.constant 1.000000e+00 : f32
    %33 = vector.broadcast %cst_14 : f32 to vector<2x64xf32>
    %34 = arith.subf %33, %25 : vector<2x64xf32>
    %35 = arith.mulf %34, %32 : vector<2x64xf32>
    %36 = arith.mulf %25, %13 : vector<2x64xf32>
    %37 = arith.addf %35, %36 : vector<2x64xf32>
    %c0_i32 = arith.constant 0 : i32
    %38 = arith.cmpi slt, %c0_i32, %0 : i32
    %39 = arith.select %38, %37, %13 : vector<2x64xf32>
    %40 = vector.extract_strided_slice %8 {offsets = [2, 0], sizes = [2, 192], strides = [1, 1]} : vector<16x192xf32> to vector<2x192xf32>
    %cst_15 = arith.constant dense<0.000000e+00> : vector<2x192xf32>
    %41 = tpu.matmul %39, %10, %cst_15 {dimension_numbers = #tpu.dot_dimension_numbers<[1], [0], [0], [1], [0, 0, 1, 1], [], []>} : vector<2x64xf32>, vector<64x192xf32>, vector<2x192xf32> -> vector<2x192xf32>
    %42 = vector.extract_strided_slice %40 {offsets = [0, 0], sizes = [2, 128], strides = [1, 1]} : vector<2x192xf32> to vector<2x128xf32>
    %43 = vector.extract_strided_slice %41 {offsets = [0, 0], sizes = [2, 128], strides = [1, 1]} : vector<2x192xf32> to vector<2x128xf32>
    %44 = arith.addf %42, %43 : vector<2x128xf32>
    %45 = arith.negf %44 : vector<2x128xf32>
    %46 = math.exp %45 : vector<2x128xf32>
    %cst_16 = arith.constant 1.000000e+00 : f32
    %47 = vector.broadcast %cst_16 : f32 to vector<2x128xf32>
    %48 = arith.addf %47, %46 : vector<2x128xf32>
    %49 = arith.divf %47, %48 : vector<2x128xf32>
    %50 = vector.extract_strided_slice %49 {offsets = [0, 0], sizes = [2, 64], strides = [1, 1]} : vector<2x128xf32> to vector<2x64xf32>
    %51 = vector.extract_strided_slice %49 {offsets = [0, 64], sizes = [2, 64], strides = [1, 1]} : vector<2x128xf32> to vector<2x64xf32>
    %52 = vector.extract_strided_slice %40 {offsets = [0, 128], sizes = [2, 64], strides = [1, 1]} : vector<2x192xf32> to vector<2x64xf32>
    %53 = vector.extract_strided_slice %41 {offsets = [0, 128], sizes = [2, 64], strides = [1, 1]} : vector<2x192xf32> to vector<2x64xf32>
    %54 = vector.broadcast %12 : vector<1x64xf32> to vector<2x64xf32>
    %55 = arith.addf %53, %54 : vector<2x64xf32>
    %56 = arith.mulf %50, %55 : vector<2x64xf32>
    %57 = arith.addf %52, %56 : vector<2x64xf32>
    %58 = math.tanh %57 : vector<2x64xf32>
    %cst_17 = arith.constant 1.000000e+00 : f32
    %59 = vector.broadcast %cst_17 : f32 to vector<2x64xf32>
    %60 = arith.subf %59, %51 : vector<2x64xf32>
    %61 = arith.mulf %60, %58 : vector<2x64xf32>
    %62 = arith.mulf %51, %39 : vector<2x64xf32>
    %63 = arith.addf %61, %62 : vector<2x64xf32>
    %c1_i32 = arith.constant 1 : i32
    %64 = arith.cmpi slt, %c1_i32, %0 : i32
    %65 = arith.select %64, %63, %39 : vector<2x64xf32>
    %66 = vector.extract_strided_slice %8 {offsets = [4, 0], sizes = [2, 192], strides = [1, 1]} : vector<16x192xf32> to vector<2x192xf32>
    %cst_18 = arith.constant dense<0.000000e+00> : vector<2x192xf32>
    %67 = tpu.matmul %65, %10, %cst_18 {dimension_numbers = #tpu.dot_dimension_numbers<[1], [0], [0], [1], [0, 0, 1, 1], [], []>} : vector<2x64xf32>, vector<64x192xf32>, vector<2x192xf32> -> vector<2x192xf32>
    %68 = vector.extract_strided_slice %66 {offsets = [0, 0], sizes = [2, 128], strides = [1, 1]} : vector<2x192xf32> to vector<2x128xf32>
    %69 = vector.extract_strided_slice %67 {offsets = [0, 0], sizes = [2, 128], strides = [1, 1]} : vector<2x192xf32> to vector<2x128xf32>
    %70 = arith.addf %68, %69 : vector<2x128xf32>
    %71 = arith.negf %70 : vector<2x128xf32>
    %72 = math.exp %71 : vector<2x128xf32>
    %cst_19 = arith.constant 1.000000e+00 : f32
    %73 = vector.broadcast %cst_19 : f32 to vector<2x128xf32>
    %74 = arith.addf %73, %72 : vector<2x128xf32>
    %75 = arith.divf %73, %74 : vector<2x128xf32>
    %76 = vector.extract_strided_slice %75 {offsets = [0, 0], sizes = [2, 64], strides = [1, 1]} : vector<2x128xf32> to vector<2x64xf32>
    %77 = vector.extract_strided_slice %75 {offsets = [0, 64], sizes = [2, 64], strides = [1, 1]} : vector<2x128xf32> to vector<2x64xf32>
    %78 = vector.extract_strided_slice %66 {offsets = [0, 128], sizes = [2, 64], strides = [1, 1]} : vector<2x192xf32> to vector<2x64xf32>
    %79 = vector.extract_strided_slice %67 {offsets = [0, 128], sizes = [2, 64], strides = [1, 1]} : vector<2x192xf32> to vector<2x64xf32>
    %80 = vector.broadcast %12 : vector<1x64xf32> to vector<2x64xf32>
    %81 = arith.addf %79, %80 : vector<2x64xf32>
    %82 = arith.mulf %76, %81 : vector<2x64xf32>
    %83 = arith.addf %78, %82 : vector<2x64xf32>
    %84 = math.tanh %83 : vector<2x64xf32>
    %cst_20 = arith.constant 1.000000e+00 : f32
    %85 = vector.broadcast %cst_20 : f32 to vector<2x64xf32>
    %86 = arith.subf %85, %77 : vector<2x64xf32>
    %87 = arith.mulf %86, %84 : vector<2x64xf32>
    %88 = arith.mulf %77, %65 : vector<2x64xf32>
    %89 = arith.addf %87, %88 : vector<2x64xf32>
    %c2_i32 = arith.constant 2 : i32
    %90 = arith.cmpi slt, %c2_i32, %0 : i32
    %91 = arith.select %90, %89, %65 : vector<2x64xf32>
    %92 = vector.extract_strided_slice %8 {offsets = [6, 0], sizes = [2, 192], strides = [1, 1]} : vector<16x192xf32> to vector<2x192xf32>
    %cst_21 = arith.constant dense<0.000000e+00> : vector<2x192xf32>
    %93 = tpu.matmul %91, %10, %cst_21 {dimension_numbers = #tpu.dot_dimension_numbers<[1], [0], [0], [1], [0, 0, 1, 1], [], []>} : vector<2x64xf32>, vector<64x192xf32>, vector<2x192xf32> -> vector<2x192xf32>
    %94 = vector.extract_strided_slice %92 {offsets = [0, 0], sizes = [2, 128], strides = [1, 1]} : vector<2x192xf32> to vector<2x128xf32>
    %95 = vector.extract_strided_slice %93 {offsets = [0, 0], sizes = [2, 128], strides = [1, 1]} : vector<2x192xf32> to vector<2x128xf32>
    %96 = arith.addf %94, %95 : vector<2x128xf32>
    %97 = arith.negf %96 : vector<2x128xf32>
    %98 = math.exp %97 : vector<2x128xf32>
    %cst_22 = arith.constant 1.000000e+00 : f32
    %99 = vector.broadcast %cst_22 : f32 to vector<2x128xf32>
    %100 = arith.addf %99, %98 : vector<2x128xf32>
    %101 = arith.divf %99, %100 : vector<2x128xf32>
    %102 = vector.extract_strided_slice %101 {offsets = [0, 0], sizes = [2, 64], strides = [1, 1]} : vector<2x128xf32> to vector<2x64xf32>
    %103 = vector.extract_strided_slice %101 {offsets = [0, 64], sizes = [2, 64], strides = [1, 1]} : vector<2x128xf32> to vector<2x64xf32>
    %104 = vector.extract_strided_slice %92 {offsets = [0, 128], sizes = [2, 64], strides = [1, 1]} : vector<2x192xf32> to vector<2x64xf32>
    %105 = vector.extract_strided_slice %93 {offsets = [0, 128], sizes = [2, 64], strides = [1, 1]} : vector<2x192xf32> to vector<2x64xf32>
    %106 = vector.broadcast %12 : vector<1x64xf32> to vector<2x64xf32>
    %107 = arith.addf %105, %106 : vector<2x64xf32>
    %108 = arith.mulf %102, %107 : vector<2x64xf32>
    %109 = arith.addf %104, %108 : vector<2x64xf32>
    %110 = math.tanh %109 : vector<2x64xf32>
    %cst_23 = arith.constant 1.000000e+00 : f32
    %111 = vector.broadcast %cst_23 : f32 to vector<2x64xf32>
    %112 = arith.subf %111, %103 : vector<2x64xf32>
    %113 = arith.mulf %112, %110 : vector<2x64xf32>
    %114 = arith.mulf %103, %91 : vector<2x64xf32>
    %115 = arith.addf %113, %114 : vector<2x64xf32>
    %c3_i32 = arith.constant 3 : i32
    %116 = arith.cmpi slt, %c3_i32, %0 : i32
    %117 = arith.select %116, %115, %91 : vector<2x64xf32>
    %118 = vector.extract_strided_slice %8 {offsets = [8, 0], sizes = [2, 192], strides = [1, 1]} : vector<16x192xf32> to vector<2x192xf32>
    %cst_24 = arith.constant dense<0.000000e+00> : vector<2x192xf32>
    %119 = tpu.matmul %117, %10, %cst_24 {dimension_numbers = #tpu.dot_dimension_numbers<[1], [0], [0], [1], [0, 0, 1, 1], [], []>} : vector<2x64xf32>, vector<64x192xf32>, vector<2x192xf32> -> vector<2x192xf32>
    %120 = vector.extract_strided_slice %118 {offsets = [0, 0], sizes = [2, 128], strides = [1, 1]} : vector<2x192xf32> to vector<2x128xf32>
    %121 = vector.extract_strided_slice %119 {offsets = [0, 0], sizes = [2, 128], strides = [1, 1]} : vector<2x192xf32> to vector<2x128xf32>
    %122 = arith.addf %120, %121 : vector<2x128xf32>
    %123 = arith.negf %122 : vector<2x128xf32>
    %124 = math.exp %123 : vector<2x128xf32>
    %cst_25 = arith.constant 1.000000e+00 : f32
    %125 = vector.broadcast %cst_25 : f32 to vector<2x128xf32>
    %126 = arith.addf %125, %124 : vector<2x128xf32>
    %127 = arith.divf %125, %126 : vector<2x128xf32>
    %128 = vector.extract_strided_slice %127 {offsets = [0, 0], sizes = [2, 64], strides = [1, 1]} : vector<2x128xf32> to vector<2x64xf32>
    %129 = vector.extract_strided_slice %127 {offsets = [0, 64], sizes = [2, 64], strides = [1, 1]} : vector<2x128xf32> to vector<2x64xf32>
    %130 = vector.extract_strided_slice %118 {offsets = [0, 128], sizes = [2, 64], strides = [1, 1]} : vector<2x192xf32> to vector<2x64xf32>
    %131 = vector.extract_strided_slice %119 {offsets = [0, 128], sizes = [2, 64], strides = [1, 1]} : vector<2x192xf32> to vector<2x64xf32>
    %132 = vector.broadcast %12 : vector<1x64xf32> to vector<2x64xf32>
    %133 = arith.addf %131, %132 : vector<2x64xf32>
    %134 = arith.mulf %128, %133 : vector<2x64xf32>
    %135 = arith.addf %130, %134 : vector<2x64xf32>
    %136 = math.tanh %135 : vector<2x64xf32>
    %cst_26 = arith.constant 1.000000e+00 : f32
    %137 = vector.broadcast %cst_26 : f32 to vector<2x64xf32>
    %138 = arith.subf %137, %129 : vector<2x64xf32>
    %139 = arith.mulf %138, %136 : vector<2x64xf32>
    %140 = arith.mulf %129, %117 : vector<2x64xf32>
    %141 = arith.addf %139, %140 : vector<2x64xf32>
    %c4_i32 = arith.constant 4 : i32
    %142 = arith.cmpi slt, %c4_i32, %0 : i32
    %143 = arith.select %142, %141, %117 : vector<2x64xf32>
    %144 = vector.extract_strided_slice %8 {offsets = [10, 0], sizes = [2, 192], strides = [1, 1]} : vector<16x192xf32> to vector<2x192xf32>
    %cst_27 = arith.constant dense<0.000000e+00> : vector<2x192xf32>
    %145 = tpu.matmul %143, %10, %cst_27 {dimension_numbers = #tpu.dot_dimension_numbers<[1], [0], [0], [1], [0, 0, 1, 1], [], []>} : vector<2x64xf32>, vector<64x192xf32>, vector<2x192xf32> -> vector<2x192xf32>
    %146 = vector.extract_strided_slice %144 {offsets = [0, 0], sizes = [2, 128], strides = [1, 1]} : vector<2x192xf32> to vector<2x128xf32>
    %147 = vector.extract_strided_slice %145 {offsets = [0, 0], sizes = [2, 128], strides = [1, 1]} : vector<2x192xf32> to vector<2x128xf32>
    %148 = arith.addf %146, %147 : vector<2x128xf32>
    %149 = arith.negf %148 : vector<2x128xf32>
    %150 = math.exp %149 : vector<2x128xf32>
    %cst_28 = arith.constant 1.000000e+00 : f32
    %151 = vector.broadcast %cst_28 : f32 to vector<2x128xf32>
    %152 = arith.addf %151, %150 : vector<2x128xf32>
    %153 = arith.divf %151, %152 : vector<2x128xf32>
    %154 = vector.extract_strided_slice %153 {offsets = [0, 0], sizes = [2, 64], strides = [1, 1]} : vector<2x128xf32> to vector<2x64xf32>
    %155 = vector.extract_strided_slice %153 {offsets = [0, 64], sizes = [2, 64], strides = [1, 1]} : vector<2x128xf32> to vector<2x64xf32>
    %156 = vector.extract_strided_slice %144 {offsets = [0, 128], sizes = [2, 64], strides = [1, 1]} : vector<2x192xf32> to vector<2x64xf32>
    %157 = vector.extract_strided_slice %145 {offsets = [0, 128], sizes = [2, 64], strides = [1, 1]} : vector<2x192xf32> to vector<2x64xf32>
    %158 = vector.broadcast %12 : vector<1x64xf32> to vector<2x64xf32>
    %159 = arith.addf %157, %158 : vector<2x64xf32>
    %160 = arith.mulf %154, %159 : vector<2x64xf32>
    %161 = arith.addf %156, %160 : vector<2x64xf32>
    %162 = math.tanh %161 : vector<2x64xf32>
    %cst_29 = arith.constant 1.000000e+00 : f32
    %163 = vector.broadcast %cst_29 : f32 to vector<2x64xf32>
    %164 = arith.subf %163, %155 : vector<2x64xf32>
    %165 = arith.mulf %164, %162 : vector<2x64xf32>
    %166 = arith.mulf %155, %143 : vector<2x64xf32>
    %167 = arith.addf %165, %166 : vector<2x64xf32>
    %c5_i32 = arith.constant 5 : i32
    %168 = arith.cmpi slt, %c5_i32, %0 : i32
    %169 = arith.select %168, %167, %143 : vector<2x64xf32>
    %170 = vector.extract_strided_slice %8 {offsets = [12, 0], sizes = [2, 192], strides = [1, 1]} : vector<16x192xf32> to vector<2x192xf32>
    %cst_30 = arith.constant dense<0.000000e+00> : vector<2x192xf32>
    %171 = tpu.matmul %169, %10, %cst_30 {dimension_numbers = #tpu.dot_dimension_numbers<[1], [0], [0], [1], [0, 0, 1, 1], [], []>} : vector<2x64xf32>, vector<64x192xf32>, vector<2x192xf32> -> vector<2x192xf32>
    %172 = vector.extract_strided_slice %170 {offsets = [0, 0], sizes = [2, 128], strides = [1, 1]} : vector<2x192xf32> to vector<2x128xf32>
    %173 = vector.extract_strided_slice %171 {offsets = [0, 0], sizes = [2, 128], strides = [1, 1]} : vector<2x192xf32> to vector<2x128xf32>
    %174 = arith.addf %172, %173 : vector<2x128xf32>
    %175 = arith.negf %174 : vector<2x128xf32>
    %176 = math.exp %175 : vector<2x128xf32>
    %cst_31 = arith.constant 1.000000e+00 : f32
    %177 = vector.broadcast %cst_31 : f32 to vector<2x128xf32>
    %178 = arith.addf %177, %176 : vector<2x128xf32>
    %179 = arith.divf %177, %178 : vector<2x128xf32>
    %180 = vector.extract_strided_slice %179 {offsets = [0, 0], sizes = [2, 64], strides = [1, 1]} : vector<2x128xf32> to vector<2x64xf32>
    %181 = vector.extract_strided_slice %179 {offsets = [0, 64], sizes = [2, 64], strides = [1, 1]} : vector<2x128xf32> to vector<2x64xf32>
    %182 = vector.extract_strided_slice %170 {offsets = [0, 128], sizes = [2, 64], strides = [1, 1]} : vector<2x192xf32> to vector<2x64xf32>
    %183 = vector.extract_strided_slice %171 {offsets = [0, 128], sizes = [2, 64], strides = [1, 1]} : vector<2x192xf32> to vector<2x64xf32>
    %184 = vector.broadcast %12 : vector<1x64xf32> to vector<2x64xf32>
    %185 = arith.addf %183, %184 : vector<2x64xf32>
    %186 = arith.mulf %180, %185 : vector<2x64xf32>
    %187 = arith.addf %182, %186 : vector<2x64xf32>
    %188 = math.tanh %187 : vector<2x64xf32>
    %cst_32 = arith.constant 1.000000e+00 : f32
    %189 = vector.broadcast %cst_32 : f32 to vector<2x64xf32>
    %190 = arith.subf %189, %181 : vector<2x64xf32>
    %191 = arith.mulf %190, %188 : vector<2x64xf32>
    %192 = arith.mulf %181, %169 : vector<2x64xf32>
    %193 = arith.addf %191, %192 : vector<2x64xf32>
    %c6_i32 = arith.constant 6 : i32
    %194 = arith.cmpi slt, %c6_i32, %0 : i32
    %195 = arith.select %194, %193, %169 : vector<2x64xf32>
    %196 = vector.extract_strided_slice %8 {offsets = [14, 0], sizes = [2, 192], strides = [1, 1]} : vector<16x192xf32> to vector<2x192xf32>
    %cst_33 = arith.constant dense<0.000000e+00> : vector<2x192xf32>
    %197 = tpu.matmul %195, %10, %cst_33 {dimension_numbers = #tpu.dot_dimension_numbers<[1], [0], [0], [1], [0, 0, 1, 1], [], []>} : vector<2x64xf32>, vector<64x192xf32>, vector<2x192xf32> -> vector<2x192xf32>
    %198 = vector.extract_strided_slice %196 {offsets = [0, 0], sizes = [2, 128], strides = [1, 1]} : vector<2x192xf32> to vector<2x128xf32>
    %199 = vector.extract_strided_slice %197 {offsets = [0, 0], sizes = [2, 128], strides = [1, 1]} : vector<2x192xf32> to vector<2x128xf32>
    %200 = arith.addf %198, %199 : vector<2x128xf32>
    %201 = arith.negf %200 : vector<2x128xf32>
    %202 = math.exp %201 : vector<2x128xf32>
    %cst_34 = arith.constant 1.000000e+00 : f32
    %203 = vector.broadcast %cst_34 : f32 to vector<2x128xf32>
    %204 = arith.addf %203, %202 : vector<2x128xf32>
    %205 = arith.divf %203, %204 : vector<2x128xf32>
    %206 = vector.extract_strided_slice %205 {offsets = [0, 0], sizes = [2, 64], strides = [1, 1]} : vector<2x128xf32> to vector<2x64xf32>
    %207 = vector.extract_strided_slice %205 {offsets = [0, 64], sizes = [2, 64], strides = [1, 1]} : vector<2x128xf32> to vector<2x64xf32>
    %208 = vector.extract_strided_slice %196 {offsets = [0, 128], sizes = [2, 64], strides = [1, 1]} : vector<2x192xf32> to vector<2x64xf32>
    %209 = vector.extract_strided_slice %197 {offsets = [0, 128], sizes = [2, 64], strides = [1, 1]} : vector<2x192xf32> to vector<2x64xf32>
    %210 = vector.broadcast %12 : vector<1x64xf32> to vector<2x64xf32>
    %211 = arith.addf %209, %210 : vector<2x64xf32>
    %212 = arith.mulf %206, %211 : vector<2x64xf32>
    %213 = arith.addf %208, %212 : vector<2x64xf32>
    %214 = math.tanh %213 : vector<2x64xf32>
    %cst_35 = arith.constant 1.000000e+00 : f32
    %215 = vector.broadcast %cst_35 : f32 to vector<2x64xf32>
    %216 = arith.subf %215, %207 : vector<2x64xf32>
    %217 = arith.mulf %216, %214 : vector<2x64xf32>
    %218 = arith.mulf %207, %195 : vector<2x64xf32>
    %219 = arith.addf %217, %218 : vector<2x64xf32>
    %c7_i32 = arith.constant 7 : i32
    %220 = arith.cmpi slt, %c7_i32, %0 : i32
    %221 = arith.select %220, %219, %195 : vector<2x64xf32>
    %c0_36 = arith.constant 0 : index
    %c0_37 = arith.constant 0 : index
    %222 = vector.load %arg6[%c0_36, %c0_37] : memref<64x64xf32, #tpu.memory_space<vmem>>, vector<64x64xf32>
    %cst_38 = arith.constant dense<0.000000e+00> : vector<2x64xf32>
    %223 = tpu.matmul %221, %222, %cst_38 {dimension_numbers = #tpu.dot_dimension_numbers<[1], [0], [0], [1], [0, 0, 1, 1], [], []>} : vector<2x64xf32>, vector<64x64xf32>, vector<2x64xf32> -> vector<2x64xf32>
    %c0_39 = arith.constant 0 : index
    %c0_40 = arith.constant 0 : index
    %224 = vector.load %arg7[%c0_39, %c0_40] : memref<1x64xf32, #tpu.memory_space<vmem>>, vector<1x64xf32>
    %225 = vector.broadcast %224 : vector<1x64xf32> to vector<2x64xf32>
    %226 = arith.addf %223, %225 : vector<2x64xf32>
    %cst_41 = arith.constant 0.000000e+00 : f32
    %227 = vector.broadcast %cst_41 : f32 to vector<2x64xf32>
    %228 = arith.maximumf %226, %227 : vector<2x64xf32>
    %c0_42 = arith.constant 0 : index
    %c0_43 = arith.constant 0 : index
    %229 = vector.load %arg8[%c0_42, %c0_43] : memref<64x8xf32, #tpu.memory_space<vmem>>, vector<64x8xf32>
    %cst_44 = arith.constant dense<0.000000e+00> : vector<2x8xf32>
    %230 = tpu.matmul %228, %229, %cst_44 {dimension_numbers = #tpu.dot_dimension_numbers<[1], [0], [0], [1], [0, 0, 1, 1], [], []>} : vector<2x64xf32>, vector<64x8xf32>, vector<2x8xf32> -> vector<2x8xf32>
    %c0_45 = arith.constant 0 : index
    %c0_46 = arith.constant 0 : index
    %231 = vector.load %arg9[%c0_45, %c0_46] : memref<1x8xf32, #tpu.memory_space<vmem>>, vector<1x8xf32>
    %232 = vector.broadcast %231 : vector<1x8xf32> to vector<2x8xf32>
    %233 = arith.addf %230, %232 : vector<2x8xf32>
    %234 = vector.extract_strided_slice %233 {offsets = [0, 0], sizes = [2, 4], strides = [1, 1]} : vector<2x8xf32> to vector<2x4xf32>
    %cst_47 = arith.constant dense<0xFF800000> : vector<2xf32>
    %235 = vector.multi_reduction <maximumf>, %234, %cst_47 [1] : vector<2x4xf32> to vector<2xf32>
    %236 = vector.shape_cast %235 : vector<2xf32> to vector<2x1xf32>
    %237 = vector.broadcast %236 : vector<2x1xf32> to vector<2x4xf32>
    %238 = arith.subf %234, %237 : vector<2x4xf32>
    %239 = math.exp %238 : vector<2x4xf32>
    %cst_48 = arith.constant dense<0.000000e+00> : vector<2xf32>
    %240 = vector.multi_reduction <add>, %239, %cst_48 [1] : vector<2x4xf32> to vector<2xf32>
    %241 = vector.shape_cast %240 : vector<2xf32> to vector<2x1xf32>
    %242 = math.log %241 : vector<2x1xf32>
    %243 = arith.addf %242, %236 : vector<2x1xf32>
    %244 = vector.broadcast %243 : vector<2x1xf32> to vector<2x4xf32>
    %245 = arith.subf %234, %244 : vector<2x4xf32>
    %246 = vector.extract_strided_slice %233 {offsets = [0, 4], sizes = [2, 4], strides = [1, 1]} : vector<2x8xf32> to vector<2x4xf32>
    %cst_49 = arith.constant dense<0xFF800000> : vector<2xf32>
    %247 = vector.multi_reduction <maximumf>, %246, %cst_49 [1] : vector<2x4xf32> to vector<2xf32>
    %248 = vector.shape_cast %247 : vector<2xf32> to vector<2x1xf32>
    %249 = vector.broadcast %248 : vector<2x1xf32> to vector<2x4xf32>
    %250 = arith.subf %246, %249 : vector<2x4xf32>
    %251 = math.exp %250 : vector<2x4xf32>
    %cst_50 = arith.constant dense<0.000000e+00> : vector<2xf32>
    %252 = vector.multi_reduction <add>, %251, %cst_50 [1] : vector<2x4xf32> to vector<2xf32>
    %253 = vector.shape_cast %252 : vector<2xf32> to vector<2x1xf32>
    %254 = math.log %253 : vector<2x1xf32>
    %255 = arith.addf %254, %248 : vector<2x1xf32>
    %256 = vector.broadcast %255 : vector<2x1xf32> to vector<2x4xf32>
    %257 = arith.subf %246, %256 : vector<2x4xf32>
    %258 = tpu.concatenate %245, %257 in 1 : vector<2x4xf32>, vector<2x4xf32> -> vector<2x8xf32>
    %c0_51 = arith.constant 0 : index
    %c0_52 = arith.constant 0 : index
    %259 = vector.load %arg10[%c0_51, %c0_52] : memref<2x8xf32, #tpu.memory_space<vmem>>, vector<2x8xf32>
    tpu.vector_store %arg10[%c0_51, %c0_52], %258 {strides = array<i32>} : memref<2x8xf32, #tpu.memory_space<vmem>>, vector<2x8xf32>,
    return
  }
}

</mosaic_0001>

<bundles_post_ra>
// kernel: tpu_custom_call.1
= control target key start
LH: loop header
LB: loop body
LE: loop exit
PB: predicated region body
PF: predicated region fallthrough
CT: control target
= control target key end

     0   :  { %16 = vsyncpa [#allocation4], 0  ;;  %s1864_s0 = inlined_call_operand.<no memory space> [shape: s32[1], index: 0, kind: input, shape index: {}]   ;;  %s1865_s1 = inlined_call_operand.vmem [shape: f32[16,64], index: 1, kind: input, shape index: {}]   ;;  %s1866_s2 = inlined_call_operand.vmem [shape: f32[1,192], index: 2, kind: input, shape index: {}]   ;;  %s1867_s3 = inlined_call_operand.hbm [shape: f32[1,192], index: 3, kind: input, shape index: {}]   ;;  %s1868_s4 = inlined_call_operand.hbm [shape: f32[1,64,192], index: 4, kind: input, shape index: {}]   ;;  %s1869_s5 = inlined_call_operand.vmem [shape: f32[1,1,64], index: 5, kind: input, shape index: {}]   ;;  %s1870_s6 = inlined_call_operand.vmem [shape: f32[64,64], index: 6, kind: input, shape index: {}]   ;;  %s1871_s7 = inlined_call_operand.vmem [shape: f32[1,64], index: 7, kind: input, shape index: {}]   ;;  %s1872_s8 = inlined_call_operand.vmem [shape: f32[64,8], index: 8, kind: input, shape index: {}]   ;;  %s1873_s9 = inlined_call_operand.vmem [shape: f32[1,8], index: 9, kind: input, shape index: {}]   ;;  %s1874_s10 = inlined_call_operand.hbm [shape: f32[2,8], index: 10, kind: output, shape index: {}]  }
   0x1   :  { %17 = vsyncpa [#allocation7], 0 }
   0x2   :  { %18 = vsyncpa [#allocation5], 0  ;;  %s1423_s13 = smov [#allocation3]   ;;  %s1424_s15 = smov [#allocation6]  }
   0x3   :  { %s31_s14 = sshll.u32 %s1423_s13, 4  ;;  %s40_s16 = sshll.u32 %s1424_s15, 4  ;;  %s32_s14 = int_to_ptr.vmem [resolvable:$true] %s31_s14  ;;  %s41_s16 = int_to_ptr.vmem [resolvable:$true] %s40_s16 }
   0x4   :  { %s1365_s17 = scalar_lea.vmem %s32_s14, 32  ;;  %p1370_p1 = scmp.lt.s32.totalorder %s32_s14, %s32_s14 }
   0x5   :  { %p1366_p0 = scmp.ne.s32.totalorder %s32_s14, %s1365_s17  ;;  %p1371_p2 = scmp.lt.s32.totalorder %s1365_s17, %s1365_s17 }
   0x7   :  { %p1372_p3 = por %p1371_p2, %p1370_p1 }
   0x9   :  { %p1373_p4 = pnand %p1372_p3, %p1366_p0 }
   0xb   :  { %1376 = shalt.err (!%p1373_p4)
}
   0xc   :  { %34 = dma.hbm_to_vmem [thread:$0]  %s1867_s3, 32, %s32_s14, [#allocation4]  }
   0xd   :  { %s1385_s20 = scalar_lea.vmem %s41_s16, 2048  ;;  %p1390_p6 = scmp.lt.s32.totalorder %s41_s16, %s41_s16 }
   0xe   :  { %p1386_p5 = scmp.ne.s32.totalorder %s41_s16, %s1385_s20  ;;  %p1391_p7 = scmp.lt.s32.totalorder %s1385_s20, %s1385_s20 }
  0x10   :  { %p1392_p8 = por %p1391_p7, %p1390_p6 }
  0x12   :  { %p1393_p9 = pnand %p1392_p8, %p1386_p5 }
  0x14   :  { %1396 = shalt.err (!%p1393_p9)
}
  0x15   :  { %s1425_s21 = smov 256   ;;  %s1426_s22 = smov 16  }
  0x16   :  { %46 = dma.hbm_to_vmem [thread:$0]  %s1868_s4, 2048, %s41_s16, [#allocation7], %s1425_s21, %s1425_s21, %s1426_s22  }
  0x17   :  { %1417 = dma.done.wait [#allocation4], 32  }
  0x18   :  { %1418 = vsyncadd [#allocation4], 4294967264 }
  0x19   :  { %1419 = dma.done.wait [#allocation7], 2048  }
  0x1a   :  { %1420 = vsyncadd [#allocation7], 4294965248  ;;  %v1427_v0 = vmov 0.0   ;;  %v1495_v1 = vld [vmem:[#allocation6 + $0x78] sm:$0xff]  ;;  %v1497_v2 = vld [vmem:[#allocation6 + $0x70] sm:$0xff]  ;;  %s1428_s25 = smov 64   ;;  %v79_v18 = vlaneseq }
  0x1b   :  { %193 = vmatprep.mubr.f32.mxu0 %v1427_v0  ;;  %299 = vmatprep.mubr.f32.mxu1 %v1427_v0  ;;  %v1499_v3 = vld [vmem:[#allocation6 + $0x68] sm:$0xff]  ;;  %v1502_v4 = vld [vmem:[#allocation6 + $0x60] sm:$0xff]  ;;  %v1506_v5 = vld [vmem:[#allocation6 + $0x58] sm:$0xff]  ;;  %vm74_vm0 = vcmask 523264   ;;  %p225_p10 = scmp.gt.s32.totalorder %s1864_s0, 0  ;;  %p333_p11 = scmp.gt.s32.totalorder %s1864_s0, 1 }
  0x1c   :  { %145 = vmatprep.subr.mxu0 %v1495_v1  ;;  %251 = vmatprep.subr.mxu1 %v1495_v1  ;;  %v1510_v6 = vld [vmem:[#allocation6 + $0x50] sm:$0xff]  ;;  %v1514_v7 = vld [vmem:[#allocation6 + $0x48] sm:$0xff]  ;;  %v1518_v8 = vld [vmem:[#allocation6 + $0x40] sm:$0xff]  ;;  %v80_v19 = vshrl.u32 %v79_v18, 7  ;;  %p442_p12 = scmp.gt.s32.totalorder %s1864_s0, 2  ;;  %p551_p13 = scmp.gt.s32.totalorder %s1864_s0, 3 }
  0x1d   :  { %146 = vmatpush1.msra.mxu0 %v1497_v2  ;;  %252 = vmatpush1.msra.mxu1 %v1497_v2  ;;  %v1523_v9 = vld [vmem:[%s1865_s1] sm:$0xff]  ;;  %v1532_v11 = vld [vmem:[#allocation6 + $0x30] sm:$0xff]  ;;  %v1536_v12 = vld [vmem:[#allocation6 + $0x28] sm:$0xff]  ;;  %s334_s13 = scalar_select %p333_p11, 1, 0  ;;  %vm1429_vm8 = vmmov 0  }
  0x1e   :  { %147 = vmatprep.subr.mxu0 %v1499_v3  ;;  %253 = vmatprep.subr.mxu1 %v1499_v3  ;;  %v1527_v10 = vld [vmem:[#allocation6 + $0x38] sm:$0xff]  ;;  %v1540_v13 = vld [vmem:[#allocation6 + $0x20] sm:$0xff]  ;;  %v1548_v15 = vld [vmem:[#allocation6 + $0x10] sm:$0xff]  ;;  %v81_v20 = vsub.s32 0, %v80_v19  ;;  %v85_v34 = vsub.s32 1, %v80_v19  ;;  %p653_p0 = scmp.gt.s32.totalorder %s1864_s0, 4 }
  0x1f   :  { %148 = vmatpush1.msra.mxu0 %v1502_v4  ;;  %254 = vmatpush1.msra.mxu1 %v1502_v4  ;;  %v1544_v14 = vld [vmem:[#allocation6 + $0x18] sm:$0xff]  ;;  %v1552_v16 = vld [vmem:[#allocation6 + $0x8] sm:$0xff]  ;;  %v1556_v17 = vld [vmem:[#allocation6] sm:$0xff]  ;;  %s443_s16 = scalar_select %p442_p12, 1, 0  ;;  %vm1178_vm10 = vcmask 58400  }
  0x20   :  { %149 = vmatprep.subr.mxu0 %v1506_v5  ;;  %255 = vmatprep.subr.mxu1 %v1506_v5  ;;  %v77_v21 = vld [vmem:[%s1866_s2] sm:$0x3]  ;;  %s552_s19 = scalar_select %p551_p13, 1, 0  ;;  %vm1164_vm11 = vcmask 25600   ;;  %vm1196_vm12 = vcmask 31744  }
  0x21   :  { %150 = vmatpush1.msra.mxu0 %v1510_v6  ;;  %68 = vrot.lane.b32.xlu0 %v1523_v9, %s1428_s25  ;;  %v1589_v23 = vrot.slane %v77_v21, %v81_v20  ;;  %v93_v24 = vld [vmem:[#allocation3] sm:$0x3]  ;;  %v1600_v35 = vrot.slane %v77_v21, %v85_v34  ;;  %s654_s23 = scalar_select %p653_p0, 1, 0  ;;  %vm1198_vm13 = vcmask 58368  }
  0x22   :  { %151 = vmatprep.subr.mxu0 %v1514_v7  ;;  %256 = vmatpush1.msra.mxu1 %v1510_v6  ;;  %v1593_v26 = vrot.slane %v93_v24, %v81_v20  ;;  %v1602_v36 = vrot.slane %v93_v24, %v85_v34  ;;  %v1609_v38 = vld [vmem:[%s1869_s5] ss:$0 sm:$0xff]  ;;  %s226_s5 = scalar_select %p225_p10, 1, 0  ;;  %v335_v24 = vstv %s334_s13 }
  0x23   :  { %152 = vmatpush1.msra.mxu0 %v1518_v8  ;;  %257 = vmatprep.subr.mxu1 %v1514_v7  ;;  %v90_v37 = vmul.f32 %v1600_v35, %v1523_v9  ;;  %vm336_vm2 = vcmp.eq.s32.totalorder %v335_v24, 1  ;;  %p761_p1 = scmp.gt.s32.totalorder %s1864_s0, 5  ;;  %p870_p2 = scmp.gt.s32.totalorder %s1864_s0, 6 }
  0x24   :  { %153 = vmatprep.subr.mxu0 %v1527_v10  ;;  %258 = vmatpush1.msra.mxu1 %v1518_v8  ;;  %v227_v47 = vstv %s226_s5  ;;  %p979_p3 = scmp.gt.s32.totalorder %s1864_s0, 7 }
  0x25   :  { %154 = vmatpush1.msra.mxu0 %v1532_v11  ;;  %259 = vmatprep.subr.mxu1 %v1527_v10  ;;  %v1612_v40 = vadd.f32 %v1602_v36, %v90_v37  ;;  %vm228_vm1 = vcmp.eq.s32.totalorder %v227_v47, 1  ;;  %s762_s4 = scalar_select %p761_p1, 1, 0 }
  0x26   :  { %155 = vmatprep.subr.mxu0 %v1536_v12  ;;  %260 = vmatpush1.msra.mxu1 %v1532_v11  ;;  %s871_s2 = scalar_select %p870_p2, 1, 0 }
  0x27   :  { %156 = vmatpush1.msra.mxu0 %v1540_v13  ;;  %261 = vmatprep.subr.mxu1 %v1536_v12  ;;  %s980_s24 = scalar_select %p979_p3, 1, 0 }
  0x28   :  { %157 = vmatprep.subr.mxu0 %v1544_v14  ;;  %262 = vmatpush1.msra.mxu1 %v1540_v13 }
  0x29   :  { %158 = vmatpush1.msra.mxu0 %v1548_v15  ;;  %263 = vmatprep.subr.mxu1 %v1544_v14 }
  0x2a   :  { %159 = vmatprep.subr.mxu0 %v1552_v16  ;;  %264 = vmatpush1.msra.mxu1 %v1548_v15 }
  0x2b   :  { %160 = vmatpush1.msra.mxu0 %v1556_v17  ;;  %265 = vmatprep.subr.mxu1 %v1552_v16 }
  0x2c   :  { %194 = vmatmul.mubr.f32.vlgmr.msra.gmra.mxu0 %v1427_v0  ;;  %266 = vmatpush1.msra.mxu1 %v1556_v17 }
  0x2d   :  { %360 = vmatprep.subr.mxu0 %v1495_v1  ;;  %408 = vmatprep.mubr.f32.mxu0 %v1427_v0 }
  0x2e   :  { %361 = vmatpush1.msra.mxu0 %v1497_v2  ;;  %469 = vmatprep.subr.mxu1 %v1495_v1 }
  0x2f   :  { %362 = vmatprep.subr.mxu0 %v1499_v3 }
  0x30   :  { %363 = vmatpush1.msra.mxu0 %v1502_v4 }
  0x31   :  { %364 = vmatprep.subr.mxu0 %v1506_v5 }
  0x32   :  { %365 = vmatpush1.msra.mxu0 %v1510_v6 }
  0x33   :  { %366 = vmatprep.subr.mxu0 %v1514_v7 }
  0x34   :  { %367 = vmatpush1.msra.mxu0 %v1518_v8 }
  0x35   :  { %368 = vmatprep.subr.mxu0 %v1527_v10 }
  0x36   :  { %369 = vmatpush1.msra.mxu0 %v1532_v11 }
  0x37   :  { %370 = vmatprep.subr.mxu0 %v1536_v12 }
  0x38   :  { %371 = vmatpush1.msra.mxu0 %v1540_v13 }
  0x39   :  { %372 = vmatprep.subr.mxu0 %v1544_v14 }
  0x3a   :  { %373 = vmatpush1.msra.mxu0 %v1548_v15 }
  0x3b   :  { %374 = vmatprep.subr.mxu0 %v1552_v16 }
  0x3c   :  { %375 = vmatpush1.msra.mxu0 %v1556_v17 }
  0x3d   :  { %578 = vmatprep.subr.mxu0 %v1495_v1 }
  0x93   :  { %v69_v22 = vpop.permute.xlu0 %68 }
  0x94   :  { %v75_v25 = vsel %vm74_vm0, %v1523_v9, %v69_v22 }
  0x95   :  { %v89_v27 = vmul.f32 %v1589_v23, %v75_v25 }
  0x97   :  { %v1597_v28 = vadd.f32 %v1593_v26, %v89_v27 }
  0xec   :  { %v195_v29 = vpop.f32.mrf.mxu0 }
  0xed   :  { %v200_v30 = vadd.f32 %v195_v29, %v1597_v28 }
  0xee   :  { %v197_v39 = vpop.f32.mrf.mxu0 }
  0xef   :  { %v1216_v31 = vmul.f32 -1.442695, %v200_v30  ;;  %v213_v41 = vadd.f32 %v1609_v38, %v197_v39 }
  0xf1   :  { %1301 = vpow2.f32 %v1216_v31 }
  0xfe   :  { %v1302_v32 = vpop.eup %1301 }
  0xff   :  { %v204_v33 = vadd.f32 1.0, %v1302_v32 }
 0x101   :  { %1303 = vrcp.f32 %v204_v33 }
 0x10e   :  { %v1304_v42 = vpop.eup %1303 }
 0x10f   :  { %v214_v43 = vmul.f32 %v1304_v42, %v213_v41  ;;  %v217_v46 = vsub.f32 1.0, %v1304_v42  ;;  %v223_v50 = vmul.f32 0.0, %v1304_v42 }
 0x111   :  { %v215_v44 = vadd.f32 %v214_v43, %v1612_v40 }
 0x113   :  { %1305 = vtanh.f32 %v215_v44 }
 0x120   :  { %v1306_v45 = vpop.eup %1305 }
 0x121   :  { %219 = vrot.lane.b32.xlu0 %v1306_v45, %s1428_s25 }
 0x193   :  { %v220_v48 = vpop.permute.xlu0 %219 }
 0x194   :  { %v222_v49 = vmul.f32 %v220_v48, %v217_v46 }
 0x196   :  { %v224_v51 = vadd.f32 %v223_v50, %v222_v49 }
 0x198   :  { %v229_v52 = vsel %vm228_vm1, %v224_v51, 0.0 }
 0x199   :  { %231 = vrot.lane.b32.xlu1 %v229_v52, %s1428_s25  ;;  %v329_v62 = vrot.slane %v229_v52, 6 }
 0x20b   :  { %v232_v53 = vpop.permute.xlu1 %231 }
 0x20c   :  { %1218 = vmatmul.mubr.msk.f32.vlgmr.msra.gmra.mxu1 %vm74_vm0, %v232_v53  ;;  %v444_v53 = vstv %s443_s16 }
 0x20d   :  { %470 = vmatpush1.msra.mxu1 %v1497_v2  ;;  %517 = vmatprep.mubr.f32.mxu1 %v1427_v0  ;;  %vm445_vm3 = vcmp.eq.s32.totalorder %v444_v53, 1 }
 0x20e   :  { %471 = vmatprep.subr.mxu1 %v1499_v3 }
 0x20f   :  { %472 = vmatpush1.msra.mxu1 %v1502_v4 }
 0x210   :  { %473 = vmatprep.subr.mxu1 %v1506_v5 }
 0x211   :  { %474 = vmatpush1.msra.mxu1 %v1510_v6 }
 0x212   :  { %475 = vmatprep.subr.mxu1 %v1514_v7 }
 0x213   :  { %476 = vmatpush1.msra.mxu1 %v1518_v8 }
 0x214   :  { %477 = vmatprep.subr.mxu1 %v1527_v10 }
 0x215   :  { %478 = vmatpush1.msra.mxu1 %v1532_v11 }
 0x216   :  { %479 = vmatprep.subr.mxu1 %v1536_v12 }
 0x217   :  { %480 = vmatpush1.msra.mxu1 %v1540_v13 }
 0x218   :  { %481 = vmatprep.subr.mxu1 %v1544_v14 }
 0x219   :  { %482 = vmatpush1.msra.mxu1 %v1548_v15 }
 0x21a   :  { %483 = vmatprep.subr.mxu1 %v1552_v16 }
 0x21b   :  { %484 = vmatpush1.msra.mxu1 %v1556_v17 }
 0x21c   :  { %679 = vmatprep.subr.mxu1 %v1495_v1 }
 0x2cc   :  { %v301_v54 = vpop.f32.mrf.mxu1 }
 0x2cd   :  { %v307_v55 = vrot.slane %v301_v54, 6 }
 0x2ce   :  { %v303_v60 = vpop.f32.mrf.mxu1 }
 0x2cf   :  { %v309_v56 = vadd.f32 %v307_v55, %v1597_v28  ;;  %v316_v61 = vadd.f32 %v1609_v38, %v303_v60 }
 0x2d1   :  { %v1219_v57 = vmul.f32 -1.442695, %v309_v56  ;;  %v318_v63 = vrot.slane %v316_v61, 6 }
 0x2d3   :  { %1307 = vpow2.f32 %v1219_v57 }
 0x2e0   :  { %v1308_v58 = vpop.eup %1307 }
 0x2e1   :  { %v313_v59 = vadd.f32 1.0, %v1308_v58 }
 0x2e3   :  { %1309 = vrcp.f32 %v313_v59 }
 0x2f0   :  { %v1310_v9 = vpop.eup %1309 }
 0x2f1   :  { %v320_v18 = vmul.f32 %v1310_v9, %v318_v63  ;;  %v331_v19 = vmul.f32 %v1310_v9, %v329_v62  ;;  %v323_v22 = vsub.f32 1.0, %v1310_v9 }
 0x2f3   :  { %v321_v20 = vadd.f32 %v320_v18, %v1612_v40 }
 0x2f5   :  { %1311 = vtanh.f32 %v321_v20 }
 0x302   :  { %v1312_v21 = vpop.eup %1311 }
 0x303   :  { %325 = vrot.lane.b32.xlu1 %v1312_v21, %s1428_s25 }
 0x375   :  { %v326_v25 = vpop.permute.xlu1 %325 }
 0x376   :  { %v328_v27 = vmul.f32 %v326_v25, %v323_v22 }
 0x378   :  { %v332_v29 = vadd.f32 %v331_v19, %v328_v27 }
 0x37a   :  { %v337_v30 = vsel %vm336_vm2, %v332_v29, %v329_v62 }
 0x37b   :  { %v339_v31 = vrot.slane %v337_v30, 2  ;;  %v438_v45 = vrot.slane %v337_v30, 6 }
 0x37d   :  { %340 = vrot.lane.b32.xlu0 %v339_v31, %s1428_s25  ;;  %v553_v31 = vstv %s552_s19 }
 0x37e   :  { %vm554_vm4 = vcmp.eq.s32.totalorder %v553_v31, 1 }
 0x3ef   :  { %v341_v32 = vpop.permute.xlu0 %340 }
 0x3f0   :  { %1220 = vmatmul.mubr.msk.f32.vlgmr.msra.gmra.mxu0 %vm74_vm0, %v341_v32 }
 0x3f1   :  { %579 = vmatpush1.msra.mxu0 %v1497_v2  ;;  %626 = vmatprep.mubr.f32.mxu0 %v1427_v0 }
 0x3f2   :  { %580 = vmatprep.subr.mxu0 %v1499_v3 }
 0x3f3   :  { %581 = vmatpush1.msra.mxu0 %v1502_v4 }
 0x3f4   :  { %582 = vmatprep.subr.mxu0 %v1506_v5 }
 0x3f5   :  { %583 = vmatpush1.msra.mxu0 %v1510_v6 }
 0x3f6   :  { %584 = vmatprep.subr.mxu0 %v1514_v7 }
 0x3f7   :  { %585 = vmatpush1.msra.mxu0 %v1518_v8 }
 0x3f8   :  { %586 = vmatprep.subr.mxu0 %v1527_v10 }
 0x3f9   :  { %587 = vmatpush1.msra.mxu0 %v1532_v11 }
 0x3fa   :  { %588 = vmatprep.subr.mxu0 %v1536_v12 }
 0x3fb   :  { %589 = vmatpush1.msra.mxu0 %v1540_v13 }
 0x3fc   :  { %590 = vmatprep.subr.mxu0 %v1544_v14 }
 0x3fd   :  { %591 = vmatpush1.msra.mxu0 %v1548_v15 }
 0x3fe   :  { %592 = vmatprep.subr.mxu0 %v1552_v16 }
 0x3ff   :  { %593 = vmatpush1.msra.mxu0 %v1556_v17 }
 0x400   :  { %788 = vmatprep.subr.mxu0 %v1495_v1 }
 0x4b0   :  { %v410_v33 = vpop.f32.mrf.mxu0 }
 0x4b1   :  { %v416_v34 = vrot.slane %v410_v33, 4 }
 0x4b2   :  { %v412_v43 = vpop.f32.mrf.mxu0 }
 0x4b3   :  { %v418_v37 = vadd.f32 %v416_v34, %v1597_v28  ;;  %v425_v44 = vadd.f32 %v1609_v38, %v412_v43 }
 0x4b5   :  { %v1221_v39 = vmul.f32 -1.442695, %v418_v37  ;;  %v427_v46 = vrot.slane %v425_v44, 4 }
 0x4b7   :  { %1313 = vpow2.f32 %v1221_v39 }
 0x4c4   :  { %v1314_v41 = vpop.eup %1313 }
 0x4c5   :  { %v422_v42 = vadd.f32 1.0, %v1314_v41 }
 0x4c7   :  { %1315 = vrcp.f32 %v422_v42 }
 0x4d4   :  { %v1316_v47 = vpop.eup %1315 }
 0x4d5   :  { %v429_v48 = vmul.f32 %v1316_v47, %v427_v46  ;;  %v440_v49 = vmul.f32 %v1316_v47, %v438_v45  ;;  %v432_v52 = vsub.f32 1.0, %v1316_v47 }
 0x4d7   :  { %v430_v50 = vadd.f32 %v429_v48, %v1612_v40 }
 0x4d9   :  { %1317 = vtanh.f32 %v430_v50 }
 0x4e6   :  { %v1318_v51 = vpop.eup %1317 }
 0x4e7   :  { %434 = vrot.lane.b32.xlu1 %v1318_v51, %s1428_s25 }
 0x559   :  { %v435_v54 = vpop.permute.xlu1 %434 }
 0x55a   :  { %v437_v55 = vmul.f32 %v435_v54, %v432_v52 }
 0x55c   :  { %v441_v56 = vadd.f32 %v440_v49, %v437_v55 }
 0x55e   :  { %v446_v57 = vsel %vm445_vm3, %v441_v56, %v438_v45  ;;  %v655_v56 = vstv %s654_s23 }
 0x55f   :  { %v448_v58 = vrot.slane %v446_v57, 4  ;;  %v547_v21 = vrot.slane %v446_v57, 6  ;;  %vm656_vm5 = vcmp.eq.s32.totalorder %v655_v56, 1 }
 0x561   :  { %449 = vrot.lane.b32.xlu0 %v448_v58, %s1428_s25 }
 0x5d3   :  { %v450_v59 = vpop.permute.xlu0 %449 }
 0x5d4   :  { %1222 = vmatmul.mubr.msk.f32.vlgmr.msra.gmra.mxu1 %vm74_vm0, %v450_v59 }
 0x5d5   :  { %680 = vmatpush1.msra.mxu1 %v1497_v2  ;;  %727 = vmatprep.mubr.f32.mxu1 %v1427_v0 }
 0x5d6   :  { %681 = vmatprep.subr.mxu1 %v1499_v3 }
 0x5d7   :  { %682 = vmatpush1.msra.mxu1 %v1502_v4 }
 0x5d8   :  { %683 = vmatprep.subr.mxu1 %v1506_v5 }
 0x5d9   :  { %684 = vmatpush1.msra.mxu1 %v1510_v6 }
 0x5da   :  { %685 = vmatprep.subr.mxu1 %v1514_v7 }
 0x5db   :  { %686 = vmatpush1.msra.mxu1 %v1518_v8 }
 0x5dc   :  { %687 = vmatprep.subr.mxu1 %v1527_v10 }
 0x5dd   :  { %688 = vmatpush1.msra.mxu1 %v1532_v11 }
 0x5de   :  { %689 = vmatprep.subr.mxu1 %v1536_v12 }
 0x5df   :  { %690 = vmatpush1.msra.mxu1 %v1540_v13 }
 0x5e0   :  { %691 = vmatprep.subr.mxu1 %v1544_v14 }
 0x5e1   :  { %692 = vmatpush1.msra.mxu1 %v1548_v15 }
 0x5e2   :  { %693 = vmatprep.subr.mxu1 %v1552_v16 }
 0x5e3   :  { %694 = vmatpush1.msra.mxu1 %v1556_v17 }
 0x5e4   :  { %897 = vmatprep.subr.mxu1 %v1495_v1 }
 0x694   :  { %v519_v60 = vpop.f32.mrf.mxu1 }
 0x695   :  { %v525_v61 = vrot.slane %v519_v60, 2 }
 0x696   :  { %v521_v19 = vpop.f32.mrf.mxu1 }
 0x697   :  { %v527_v62 = vadd.f32 %v525_v61, %v1597_v28  ;;  %v534_v20 = vadd.f32 %v1609_v38, %v521_v19  ;;  %v65_v28 = vld [vmem:[%s1865_s1 + $0x8] sm:$0xff] }
 0x698   :  { %v92_v50 = vmul.f32 %v1600_v35, %v65_v28 }
 0x699   :  { %v1223_v63 = vmul.f32 -1.442695, %v527_v62  ;;  %v536_v22 = vrot.slane %v534_v20, 2 }
 0x69a   :  { %v1729_v52 = vadd.f32 %v1602_v36, %v92_v50 }
 0x69b   :  { %1319 = vpow2.f32 %v1223_v63  ;;  %v763_v63 = vstv %s762_s4 }
 0x69c   :  { %vm764_vm6 = vcmp.eq.s32.totalorder %v763_v63, 1 }
 0x6a8   :  { %v1320_v9 = vpop.eup %1319 }
 0x6a9   :  { %v531_v18 = vadd.f32 1.0, %v1320_v9 }
 0x6ab   :  { %1321 = vrcp.f32 %v531_v18 }
 0x6b8   :  { %v1322_v24 = vpop.eup %1321 }
 0x6b9   :  { %v538_v25 = vmul.f32 %v1322_v24, %v536_v22  ;;  %v549_v27 = vmul.f32 %v1322_v24, %v547_v21  ;;  %v541_v30 = vsub.f32 1.0, %v1322_v24 }
 0x6bb   :  { %v539_v29 = vadd.f32 %v538_v25, %v1612_v40 }
 0x6bd   :  { %1323 = vtanh.f32 %v539_v29 }
 0x6ca   :  { %v1324_v1 = vpop.eup %1323 }
 0x6cb   :  { %543 = vrot.lane.b32.xlu1 %v1324_v1, %s1428_s25 }
 0x6cf   :  { %70 = vrot.lane.b32.xlu1 %v65_v28, %s1428_s25 }
 0x73d   :  { %v544_v32 = vpop.permute.xlu1 %543 }
 0x73e   :  { %v546_v33 = vmul.f32 %v544_v32, %v541_v30 }
 0x740   :  { %v550_v40 = vadd.f32 %v549_v27, %v546_v33 }
 0x741   :  { %v71_v41 = vpop.permute.xlu1 %70 }
 0x742   :  { %v555_v34 = vsel %vm554_vm4, %v550_v40, %v547_v21  ;;  %v76_v42 = vsel %vm74_vm0, %v65_v28, %v71_v41 }
 0x743   :  { %v557_v37 = vrot.slane %v555_v34, 6  ;;  %v91_v43 = vmul.f32 %v1589_v23, %v76_v42 }
 0x745   :  { %558 = vrot.lane.b32.xlu0 %v557_v37, %s1428_s25  ;;  %v1724_v44 = vadd.f32 %v1593_v26, %v91_v43  ;;  %v872_v43 = vstv %s871_s2 }
 0x746   :  { %vm873_vm7 = vcmp.eq.s32.totalorder %v872_v43, 1 }
 0x7b7   :  { %v559_v39 = vpop.permute.xlu0 %558 }
 0x7b8   :  { %1224 = vmatmul.mubr.msk.f32.vlgmr.msra.gmra.mxu0 %vm74_vm0, %v559_v39 }
 0x7b9   :  { %789 = vmatpush1.msra.mxu0 %v1497_v2  ;;  %836 = vmatprep.mubr.f32.mxu0 %v1427_v0 }
 0x7ba   :  { %790 = vmatprep.subr.mxu0 %v1499_v3 }
 0x7bb   :  { %791 = vmatpush1.msra.mxu0 %v1502_v4 }
 0x7bc   :  { %792 = vmatprep.subr.mxu0 %v1506_v5 }
 0x7bd   :  { %793 = vmatpush1.msra.mxu0 %v1510_v6 }
 0x7be   :  { %794 = vmatprep.subr.mxu0 %v1514_v7 }
 0x7bf   :  { %795 = vmatpush1.msra.mxu0 %v1518_v8 }
 0x7c0   :  { %796 = vmatprep.subr.mxu0 %v1527_v10 }
 0x7c1   :  { %797 = vmatpush1.msra.mxu0 %v1532_v11 }
 0x7c2   :  { %798 = vmatprep.subr.mxu0 %v1536_v12 }
 0x7c3   :  { %799 = vmatpush1.msra.mxu0 %v1540_v13 }
 0x7c4   :  { %800 = vmatprep.subr.mxu0 %v1544_v14 }
 0x7c5   :  { %801 = vmatpush1.msra.mxu0 %v1548_v15 }
 0x7c6   :  { %802 = vmatprep.subr.mxu0 %v1552_v16 }
 0x7c7   :  { %803 = vmatpush1.msra.mxu0 %v1556_v17 }
 0x7c8   :  { %1254 = vmatprep.subr.mxu0 %v1427_v0 }
 0x878   :  { %v628_v45 = vpop.f32.mrf.mxu0 }
 0x879   :  { %v633_v46 = vadd.f32 %v628_v45, %v1724_v44 }
 0x87a   :  { %v630_v51 = vpop.f32.mrf.mxu0 }
 0x87b   :  { %v1225_v47 = vmul.f32 -1.442695, %v633_v46  ;;  %v640_v53 = vadd.f32 %v1609_v38, %v630_v51 }
 0x87d   :  { %1325 = vpow2.f32 %v1225_v47 }
 0x88a   :  { %v1326_v48 = vpop.eup %1325 }
 0x88b   :  { %v637_v49 = vadd.f32 1.0, %v1326_v48 }
 0x88d   :  { %1327 = vrcp.f32 %v637_v49 }
 0x89a   :  { %v1328_v23 = vpop.eup %1327 }
 0x89b   :  { %v641_v54 = vmul.f32 %v1328_v23, %v640_v53  ;;  %v644_v35 = vsub.f32 1.0, %v1328_v23  ;;  %v651_v36 = vmul.f32 %v1328_v23, %v557_v37 }
 0x89d   :  { %v642_v26 = vadd.f32 %v641_v54, %v1729_v52 }
 0x89f   :  { %1329 = vtanh.f32 %v642_v26 }
 0x8ac   :  { %v1330_v55 = vpop.eup %1329 }
 0x8ad   :  { %646 = vrot.lane.b32.xlu0 %v1330_v55, %s1428_s25 }
 0x91f   :  { %v647_v57 = vpop.permute.xlu0 %646 }
 0x920   :  { %v649_v58 = vmul.f32 %v647_v57, %v644_v35 }
 0x922   :  { %v652_v59 = vadd.f32 %v651_v36, %v649_v58 }
 0x924   :  { %v657_v60 = vsel %vm656_vm5, %v652_v59, %v557_v37 }
 0x925   :  { %659 = vrot.lane.b32.xlu1 %v657_v60, %s1428_s25 }
 0x997   :  { %v660_v61 = vpop.permute.xlu1 %659 }
 0x998   :  { %1226 = vmatmul.mubr.msk.f32.vlgmr.msra.gmra.mxu1 %vm74_vm0, %v660_v61 }
 0x999   :  { %898 = vmatpush1.msra.mxu1 %v1497_v2  ;;  %945 = vmatprep.mubr.f32.mxu1 %v1427_v0 }
 0x99a   :  { %899 = vmatprep.subr.mxu1 %v1499_v3 }
 0x99b   :  { %900 = vmatpush1.msra.mxu1 %v1502_v4 }
 0x99c   :  { %901 = vmatprep.subr.mxu1 %v1506_v5 }
 0x99d   :  { %902 = vmatpush1.msra.mxu1 %v1510_v6 }
 0x99e   :  { %903 = vmatprep.subr.mxu1 %v1514_v7 }
 0x99f   :  { %904 = vmatpush1.msra.mxu1 %v1518_v8 }
 0x9a0   :  { %905 = vmatprep.subr.mxu1 %v1527_v10 }
 0x9a1   :  { %906 = vmatpush1.msra.mxu1 %v1532_v11  ;;  %v757_v11 = vrot.slane %v657_v60, 6 }
 0x9a2   :  { %907 = vmatprep.subr.mxu1 %v1536_v12 }
 0x9a3   :  { %908 = vmatpush1.msra.mxu1 %v1540_v13 }
 0x9a4   :  { %909 = vmatprep.subr.mxu1 %v1544_v14 }
 0x9a5   :  { %910 = vmatpush1.msra.mxu1 %v1548_v15 }
 0x9a6   :  { %911 = vmatprep.subr.mxu1 %v1552_v16 }
 0x9a7   :  { %912 = vmatpush1.msra.mxu1 %v1556_v17 }
 0x9a8   :  { %1273 = vmatprep.subr.mxu1 %v1427_v0 }
 0xa58   :  { %v729_v2 = vpop.f32.mrf.mxu1 }
 0xa59   :  { %v735_v3 = vrot.slane %v729_v2, 6  ;;  %v990_v2 = vld [vmem:[%s1870_s6 + $0x30] sm:$0xff] }
 0xa5a   :  { %v731_v8 = vpop.f32.mrf.mxu1 }
 0xa5b   :  { %v737_v4 = vadd.f32 %v735_v3, %v1724_v44  ;;  %v744_v10 = vadd.f32 %v1609_v38, %v731_v8  ;;  %v1083_v8 = vld [vmem:[%s1872_s8 + $0x38] sm:$0xff] }
 0xa5d   :  { %v1227_v5 = vmul.f32 -1.442695, %v737_v4  ;;  %v746_v12 = vrot.slane %v744_v10, 6  ;;  %v987_v4 = vld [vmem:[%s1870_s6 + $0x18] sm:$0xff]  ;;  %v1082_v10 = vld [vmem:[%s1872_s8 + $0x30] sm:$0xff] }
 0xa5f   :  { %1331 = vpow2.f32 %v1227_v5  ;;  %v986_v5 = vld [vmem:[%s1870_s6 + $0x10] sm:$0xff] }
 0xa6c   :  { %v1332_v6 = vpop.eup %1331 }
 0xa6d   :  { %v741_v7 = vadd.f32 1.0, %v1332_v6  ;;  %v985_v6 = vld [vmem:[%s1870_s6 + $0x8] sm:$0xff] }
 0xa6f   :  { %1333 = vrcp.f32 %v741_v7  ;;  %v984_v7 = vld [vmem:[%s1870_s6] sm:$0xff] }
 0xa7c   :  { %v1334_v13 = vpop.eup %1333 }
 0xa7d   :  { %v748_v14 = vmul.f32 %v1334_v13, %v746_v12  ;;  %v759_v15 = vmul.f32 %v1334_v13, %v757_v11  ;;  %v751_v62 = vsub.f32 1.0, %v1334_v13  ;;  %v981_v13 = vstv %s980_s24 }
 0xa7e   :  { %vm982_vm9 = vcmp.eq.s32.totalorder %v981_v13, 1 }
 0xa7f   :  { %v749_v16 = vadd.f32 %v748_v14, %v1729_v52  ;;  %v1080_v14 = vld [vmem:[%s1872_s8 + $0x20] sm:$0xff] }
 0xa81   :  { %1335 = vtanh.f32 %v749_v16 }
 0xa8e   :  { %v1336_v17 = vpop.eup %1335 }
 0xa8f   :  { %753 = vrot.lane.b32.xlu0 %v1336_v17, %s1428_s25  ;;  %v1079_v17 = vld [vmem:[%s1872_s8 + $0x18] sm:$0xff] }
 0xb01   :  { %v754_v9 = vpop.permute.xlu0 %753 }
 0xb02   :  { %v756_v18 = vmul.f32 %v754_v9, %v751_v62 }
 0xb04   :  { %v760_v19 = vadd.f32 %v759_v15, %v756_v18 }
 0xb06   :  { %v765_v20 = vsel %vm764_vm6, %v760_v19, %v757_v11  ;;  %v1081_v11 = vld [vmem:[%s1872_s8 + $0x28] sm:$0xff]  ;;  %v1078_v19 = vld [vmem:[%s1872_s8 + $0x10] sm:$0xff] }
 0xb07   :  { %v767_v21 = vrot.slane %v765_v20, 2  ;;  %v866_v32 = vrot.slane %v765_v20, 6  ;;  %v1077_v20 = vld [vmem:[%s1872_s8 + $0x8] sm:$0xff] }
 0xb09   :  { %768 = vrot.lane.b32.xlu1 %v767_v21, %s1428_s25  ;;  %v1076_v21 = vld [vmem:[%s1872_s8] sm:$0xff]  ;;  %s1431_s8 = smov [#allocation8]  }
 0xb7b   :  { %v769_v22 = vpop.permute.xlu1 %768 }
 0xb7c   :  { %1228 = vmatmul.mubr.msk.f32.vlgmr.msra.gmra.mxu0 %vm74_vm0, %v769_v22  ;;  %v1232_v22 = vld [vmem:[%s1871_s7] ss:$0 sm:$0xff]  ;;  %s1430_s7 = smov 124  }
 0xb7d   :  { %1270 = vmatprep.mubr.msk.f32.mxu0 %vm1429_vm8, %v1427_v0 }
 0xc3c   :  { %v838_v24 = vpop.f32.mrf.mxu0 }
 0xc3d   :  { %v844_v25 = vrot.slane %v838_v24, 4 }
 0xc3e   :  { %v840_v30 = vpop.f32.mrf.mxu0 }
 0xc3f   :  { %v846_v27 = vadd.f32 %v844_v25, %v1724_v44  ;;  %v853_v31 = vadd.f32 %v1609_v38, %v840_v30 }
 0xc41   :  { %v1229_v29 = vmul.f32 -1.442695, %v846_v27  ;;  %v855_v33 = vrot.slane %v853_v31, 4 }
 0xc43   :  { %1337 = vpow2.f32 %v1229_v29 }
 0xc50   :  { %v1338_v1 = vpop.eup %1337 }
 0xc51   :  { %v850_v28 = vadd.f32 1.0, %v1338_v1  ;;  %v1234_v1 = vld [vmem:[%s1873_s9] ss:$0 sm:$0xff]  ;;  %s1206_s9 = sshll.u32 %s1431_s8, 4  ;;  %s1207_s9 = int_to_ptr.vmem [resolvable:$true] %s1206_s9 }
 0xc52   :  { %s1397_s19 = scalar_lea.vmem %s1207_s9, 32  ;;  %p1402_p5 = scmp.lt.s32.totalorder %s1207_s9, %s1207_s9 }
 0xc53   :  { %1339 = vrcp.f32 %v850_v28  ;;  %p1398_p4 = scmp.ne.s32.totalorder %s1207_s9, %s1397_s19  ;;  %p1403_p6 = scmp.lt.s32.totalorder %s1397_s19, %s1397_s19 }
 0xc55   :  { %p1404_p7 = por %p1403_p6, %p1402_p5 }
 0xc57   :  { %p1405_p8 = pnand %p1404_p7, %p1398_p4 }
 0xc60   :  { %v1340_v40 = vpop.eup %1339 }
 0xc61   :  { %v857_v34 = vmul.f32 %v1340_v40, %v855_v33  ;;  %v868_v37 = vmul.f32 %v1340_v40, %v866_v32  ;;  %v860_v42 = vsub.f32 1.0, %v1340_v40 }
 0xc63   :  { %v858_v39 = vadd.f32 %v857_v34, %v1729_v52 }
 0xc65   :  { %1341 = vtanh.f32 %v858_v39 }
 0xc72   :  { %v1342_v41 = vpop.eup %1341 }
 0xc73   :  { %862 = vrot.lane.b32.xlu0 %v1342_v41, %s1428_s25 }
 0xce5   :  { %v863_v45 = vpop.permute.xlu0 %862 }
 0xce6   :  { %v865_v46 = vmul.f32 %v863_v45, %v860_v42 }
 0xce8   :  { %v869_v47 = vadd.f32 %v868_v37, %v865_v46 }
 0xcea   :  { %v1772_v48 = vsel %vm873_vm7, %v869_v47, %v866_v32 }
 0xceb   :  { %v876_v49 = vrot.slane %v1772_v48, 4  ;;  %v975_v57 = vrot.slane %v1772_v48, 6 }
 0xced   :  { %877 = vrot.lane.b32.xlu1 %v876_v49, %s1428_s25 }
 0xd5f   :  { %v878_v50 = vpop.permute.xlu1 %877 }
 0xd60   :  { %1230 = vmatmul.mubr.msk.f32.vlgmr.msra.gmra.mxu1 %vm74_vm0, %v878_v50 }
 0xd61   :  { %1289 = vmatprep.mubr.msk.f32.mxu1 %vm1429_vm8, %v1427_v0  ;;  %1274 = vmatpush3.msra.mxu1 %v1083_v8 }
 0xd62   :  { %1275 = vmatprep.subr.mxu1 %v1427_v0 }
 0xd63   :  { %1276 = vmatpush3.msra.mxu1 %v1082_v10 }
 0xd64   :  { %1277 = vmatprep.subr.mxu1 %v1427_v0 }
 0xd65   :  { %1278 = vmatpush3.msra.mxu1 %v1081_v11 }
 0xd66   :  { %1279 = vmatprep.subr.mxu1 %v1427_v0 }
 0xd67   :  { %1280 = vmatpush3.msra.mxu1 %v1080_v14 }
 0xd68   :  { %1281 = vmatprep.subr.mxu1 %v1427_v0 }
 0xd69   :  { %1282 = vmatpush3.msra.mxu1 %v1079_v17 }
 0xd6a   :  { %1283 = vmatprep.subr.mxu1 %v1427_v0 }
 0xd6b   :  { %1284 = vmatpush3.msra.mxu1 %v1078_v19 }
 0xd6c   :  { %1285 = vmatprep.subr.mxu1 %v1427_v0 }
 0xd6d   :  { %1286 = vmatpush3.msra.mxu1 %v1077_v20 }
 0xd6e   :  { %1287 = vmatprep.subr.mxu1 %v1427_v0 }
 0xd6f   :  { %1288 = vmatpush3.msra.mxu1 %v1076_v21 }
 0xe20   :  { %v947_v51 = vpop.f32.mrf.mxu1 }
 0xe21   :  { %v953_v53 = vrot.slane %v947_v51, 2 }
 0xe22   :  { %v949_v35 = vpop.f32.mrf.mxu1 }
 0xe23   :  { %v955_v23 = vadd.f32 %v953_v53, %v1724_v44  ;;  %v962_v56 = vadd.f32 %v1609_v38, %v949_v35  ;;  %v991_v44 = vld [vmem:[%s1870_s6 + $0x38] sm:$0xff]  ;;  %v989_v38 = vld [vmem:[%s1870_s6 + $0x28] sm:$0xff] }
 0xe24   :  { %1255 = vmatpush3.msra.mxu0 %v991_v44 }
 0xe25   :  { %v1231_v54 = vmul.f32 -1.442695, %v955_v23  ;;  %v964_v36 = vrot.slane %v962_v56, 2  ;;  %1256 = vmatprep.subr.mxu0 %v1427_v0 }
 0xe26   :  { %1257 = vmatpush3.msra.mxu0 %v990_v2 }
 0xe27   :  { %1343 = vpow2.f32 %v1231_v54  ;;  %1258 = vmatprep.subr.mxu0 %v1427_v0 }
 0xe28   :  { %1259 = vmatpush3.msra.mxu0 %v989_v38 }
 0xe29   :  { %1260 = vmatprep.subr.mxu0 %v1427_v0 }
 0xe34   :  { %v1344_v26 = vpop.eup %1343 }
 0xe35   :  { %v959_v55 = vadd.f32 1.0, %v1344_v26 }
 0xe37   :  { %1345 = vrcp.f32 %v959_v55 }
 0xe44   :  { %v1346_v58 = vpop.eup %1345 }
 0xe45   :  { %v966_v59 = vmul.f32 %v1346_v58, %v964_v36  ;;  %v977_v60 = vmul.f32 %v1346_v58, %v975_v57  ;;  %v969_v12 = vsub.f32 1.0, %v1346_v58 }
 0xe47   :  { %v967_v61 = vadd.f32 %v966_v59, %v1729_v52  ;;  %v988_v52 = vld [vmem:[%s1870_s6 + $0x20] sm:$0xff] }
 0xe48   :  { %1261 = vmatpush3.msra.mxu0 %v988_v52 }
 0xe49   :  { %1347 = vtanh.f32 %v967_v61  ;;  %1262 = vmatprep.subr.mxu0 %v1427_v0 }
 0xe4a   :  { %1263 = vmatpush3.msra.mxu0 %v987_v4 }
 0xe4b   :  { %1264 = vmatprep.subr.mxu0 %v1427_v0 }
 0xe4c   :  { %1265 = vmatpush3.msra.mxu0 %v986_v5 }
 0xe4d   :  { %1266 = vmatprep.subr.mxu0 %v1427_v0 }
 0xe4e   :  { %1267 = vmatpush3.msra.mxu0 %v985_v6 }
 0xe4f   :  { %1268 = vmatprep.subr.mxu0 %v1427_v0 }
 0xe50   :  { %1269 = vmatpush3.msra.mxu0 %v984_v7 }
 0xe56   :  { %v1348_v3 = vpop.eup %1347 }
 0xe57   :  { %971 = vrot.lane.b32.xlu0 %v1348_v3, %s1428_s25 }
 0xec9   :  { %v972_v15 = vpop.permute.xlu0 %971 }
 0xeca   :  { %v974_v16 = vmul.f32 %v972_v15, %v969_v12 }
 0xecc   :  { %v978_v62 = vadd.f32 %v977_v60, %v974_v16 }
 0xece   :  { %v983_v63 = vsel %vm982_vm9, %v978_v62, %v975_v57 }
 0xecf   :  { %v1000_v9 = vrot.slane %v983_v63, 6 }
 0xed1   :  { %1001 = vrot.lane.b32.xlu1 %v1000_v9, %s1428_s25 }
 0xf43   :  { %v1002_v18 = vpop.permute.xlu1 %1001 }
 0xf44   :  { %1271 = vmatmul.mubr.msk.f32.vlgmr.msra.gmra.mxu0 %vm74_vm0, %v1002_v18 }
0x1004   :  { %v1071_v24 = vpop.f32.mrf.mxu0 }
0x1005   :  { %v1072_v25 = vadd.f32 %v1232_v22, %v1071_v24 }
0x1006   :  { %v1272_v27 = vpop.f32.mrf.mxu0 }
0x1007   :  { %v1075_v29 = vmax.f32 %v1072_v25, 0.0 }
0x1009   :  { %1290 = vmatmul.mubr.msk.f32.vlgmr.msra.gmra.mxu1 %vm74_vm0, %v1075_v29 }
0x10c9   :  { %v1160_v0 = vpop.f32.mrf.mxu1 }
0x10ca   :  { %v1161_v28 = vadd.f32 %v1234_v1, %v1160_v0 }
0x10cb   :  { %v1291_v30 = vpop.f32.mrf.mxu1 }
0x10cc   :  { %v1179_v31 = vsel %vm1178_vm10, %v1161_v28, -inf  ;;  %v1165_v32 = vsel %vm1164_vm11, %v1161_v28, -inf }
0x10cd   :  { %1180 = vmax.xlane.f32.xlu0 %v1179_v31  ;;  %1166 = vmax.xlane.f32.xlu1 %v1165_v32 }
0x1156   :  { %v1181_v33 = vpop.xlane.xlu0 %1180  ;;  %v1167_v40 = vpop.xlane.xlu1 %1166 }
0x1157   :  { %v1182_v34 = vsub.f32 %v1161_v28, %v1181_v33  ;;  %v1168_v37 = vsub.f32 %v1161_v28, %v1167_v40 }
0x1159   :  { %v1183_v39 = vmul.f32 1.442695, %v1182_v34  ;;  %v1169_v41 = vmul.f32 1.442695, %v1168_v37 }
0x115b   :  { %1349 = vpow2.f32 %v1183_v39 }
0x115c   :  { %1351 = vpow2.f32 %v1169_v41 }
0x1168   :  { %v1350_v42 = vpop.eup %1349 }
0x1169   :  { %v1352_v43 = vpop.eup %1351  ;;  %1186 = vrot.lane.b32.xlu0 %v1350_v42, %s1430_s7 }
0x116a   :  { %v1171_v45 = vsel %vm1164_vm11, %v1352_v43, 0.0 }
0x116b   :  { %1172 = vadd.xlane.f32.xlu1 %v1171_v45 }
0x11db   :  { %v1187_v46 = vpop.permute.xlu0 %1186 }
0x11dc   :  { %v1189_v47 = vsel %vm1164_vm11, %v1187_v46, 0.0 }
0x11dd   :  { %1190 = vadd.xlane.f32.xlu1 %v1189_v47 }
0x11f4   :  { %v1173_v48 = vpop.xlane.xlu1 %1172 }
0x11f5   :  { %1353 = vlog2.f32 %v1173_v48 }
0x1202   :  { %v1354_v50 = vpop.eup %1353 }
0x1203   :  { %v1175_v51 = vmul.f32 0.6931472, %v1354_v50 }
0x1205   :  { %v1176_v23 = vadd.f32 %v1175_v51, %v1167_v40 }
0x1207   :  { %v1177_v55 = vsub.f32 %v1161_v28, %v1176_v23 }
0x1266   :  { %v1191_v49 = vpop.xlane.xlu1 %1190 }
0x1267   :  { %1355 = vlog2.f32 %v1191_v49 }
0x1274   :  { %v1356_v53 = vpop.eup %1355 }
0x1275   :  { %v1193_v54 = vmul.f32 0.6931472, %v1356_v53 }
0x1277   :  { %v1194_v26 = vadd.f32 %v1193_v54, %v1181_v33 }
0x1279   :  { %v1195_v35 = vsub.f32 %v1161_v28, %v1194_v26 }
0x127b   :  { %v1197_v56 = vsel %vm1196_vm12, %v1177_v55, %v1195_v35 }
0x127c   :  { %1199 = vst.msk [vmem:[#allocation8] sm:$0x3] %vm1198_vm13, %v1197_v56 }
0x127d   :  { %1408 = shalt.err (!%p1405_p8)
}
0x127e   :  { %1209 = dma.vmem_to_hbm [thread:$0]  %s1207_s9, 32, %s1874_s10, [#allocation5]  }
0x127f   :  { %1421 = dma.done.wait [#allocation5], 32  }
0x1280   :  { %1422 = vsyncadd [#allocation5], 4294967264 }
0x1281   :  { %1213 = vsyncpa [#allocation4], 1 }
0x1282   :  { %1214 = vsyncpa [#allocation7], 1 }
0x1283   :  { %1215 = vsyncpa [#allocation5], 1 }

</bundles_post_ra>
